<compile_context>
chip_gen: v7x
topology: tpu7x:2x2x1
jax: 0.10.0
libtpu: 0.0.40
codegen_flags: <defaults>
</compile_context>

<pallas_src>
import jax
import jax.numpy as jnp
from jax.experimental import pallas as pl
from jax.experimental.pallas import tpu as pltpu

IN_FEATURES = 28 * 28          # input_channels=1 path of the PyTorch module
H1, H2, H3, OUT = 256, 128, 64, 10
OUT_PAD = 128                  # pad the 10-wide head to a full 128-lane output store
MAX_BATCH_TILE = 512           # multiple of 256; bf16 x-tile is ~0.8 MB (double-buffered 1.6 MB)


def _round_up(n, m):
    return -(-n // m) * m


def _choose_batch_tile(n):
    """Sublane-aligned (multiple of 8) batch tile, capped at MAX_BATCH_TILE, with >=2
    roughly-equal grid steps for large batches so v7x's two TensorCores both get work."""
    n8 = _round_up(max(n, 1), 8)
    if n8 <= MAX_BATCH_TILE:
        return n8                                   # one tile; batch too small to split
    n_tiles = _round_up(n8, MAX_BATCH_TILE) // MAX_BATCH_TILE   # >= 2
    return _round_up(-(-n8 // n_tiles), 8)


def mlp_kernel(x_ref, w1_ref, b1_ref, w2_ref, b2_ref, w3_ref, b3_ref,
               w4_ref, b4_ref, o_ref):
    """Fused 4-layer MLP forward for one batch tile.
    bf16 operands on the MXU, f32 accumulate + bias + ReLU, bf16 inter-layer activations."""
    def layer(h, w_ref, b_ref):
        return jnp.dot(h, w_ref[...], preferred_element_type=jnp.float32) + b_ref[...]

    h = jnp.maximum(layer(x_ref[...], w1_ref, b1_ref), 0.0).astype(jnp.bfloat16)
    h = jnp.maximum(layer(h, w2_ref, b2_ref), 0.0).astype(jnp.bfloat16)
    h = jnp.maximum(layer(h, w3_ref, b3_ref), 0.0).astype(jnp.bfloat16)
    o_ref[...] = layer(h, w4_ref, b4_ref).astype(o_ref.dtype)


def fully_connected_mnist(x, params):
    """Forward pass matching the PyTorch module. x: (N, 1, 28, 28) or (N, 784). Returns f32 (N, 10)."""
    N = x.shape[0]
    x2 = x.reshape(N, -1)                             # nn.Flatten()
    assert x2.shape[1] == IN_FEATURES, "only the input_channels==1 (28x28x1) path is supported"
    x2 = x2.astype(jnp.bfloat16)

    # PyTorch Linear stores weights as (out, in); transpose once in the wrapper so every
    # matmul is a lane-dense (B, K) @ (K, N). Weights bf16, biases f32.
    w1 = params["w1"].T.astype(jnp.bfloat16)
    w2 = params["w2"].T.astype(jnp.bfloat16)
    w3 = params["w3"].T.astype(jnp.bfloat16)
    b1 = params["b1"].reshape(1, H1).astype(jnp.float32)
    b2 = params["b2"].reshape(1, H2).astype(jnp.float32)
    b3 = params["b3"].reshape(1, H3).astype(jnp.float32)

    # Pad the final layer from 10 -> 128 output lanes with zeros (unmasked 128-lane stores
    # in-kernel); the extra columns are sliced off below.
    w4 = (jnp.zeros((H3, OUT_PAD), jnp.float32)
          .at[:, :OUT].set(params["w4"].T).astype(jnp.bfloat16))
    b4 = (jnp.zeros((1, OUT_PAD), jnp.float32)
          .at[:, :OUT].set(params["b4"].reshape(1, OUT)))

    # Batch tiling: pad the batch up to a multiple of the chosen sublane-aligned tile.
    batch_tile = _choose_batch_tile(N)
    n_padded = _round_up(N, batch_tile)
    if n_padded != N:
        x2 = jnp.concatenate(
            [x2, jnp.zeros((n_padded - N, IN_FEATURES), x2.dtype)], axis=0)
    grid = (n_padded // batch_tile,)

    def full_spec(shape):
        return pl.BlockSpec(shape, lambda i: (0, 0))   # resident weights / biases

    out_padded = pl.pallas_call(
        mlp_kernel,
        out_shape=jax.ShapeDtypeStruct((n_padded, OUT_PAD), jnp.bfloat16),
        grid=grid,
        in_specs=[
            pl.BlockSpec((batch_tile, IN_FEATURES), lambda i: (i, 0)),   # x tile
            full_spec((IN_FEATURES, H1)), full_spec((1, H1)),
            full_spec((H1, H2)),          full_spec((1, H2)),
            full_spec((H2, H3)),          full_spec((1, H3)),
            full_spec((H3, OUT_PAD)),     full_spec((1, OUT_PAD)),
        ],
        out_specs=pl.BlockSpec((batch_tile, OUT_PAD), lambda i: (i, 0)),
        compiler_params=pltpu.CompilerParams(
            dimension_semantics=("parallel",)),        # batch tiles are independent
    )(x2, w1, b1, w2, b2, w3, b3, w4, b4)

    return out_padded[:N, :OUT].astype(jnp.float32)


# ---------------- pure-JAX reference (for correctness check) ----------------

def ref_forward(x, params):
    h = x.reshape(x.shape[0], -1).astype(jnp.float32)
    layers = (("w1", "b1", True), ("w2", "b2", True), ("w3", "b3", True), ("w4", "b4", False))
    for wk, bk, relu in layers:
        h = jnp.dot(h, params[wk].T, precision=jax.lax.Precision.HIGHEST) + params[bk]
        if relu:
            h = jnp.maximum(h, 0.0)
    return h


def init_params(key):
    """PyTorch-style Linear init: U(-1/sqrt(fan_in), 1/sqrt(fan_in)) for weights and biases."""
    dims = [(IN_FEATURES, H1), (H1, H2), (H2, H3), (H3, OUT)]
    ks = jax.random.split(key, 2 * len(dims))
    params = {}
    for idx, (fan_in, fan_out) in enumerate(dims):
        bound = 1.0 / (fan_in ** 0.5)
        params[f"w{idx + 1}"] = jax.random.uniform(
            ks[2 * idx], (fan_out, fan_in), jnp.float32, -bound, bound)
        params[f"b{idx + 1}"] = jax.random.uniform(
            ks[2 * idx + 1], (fan_out,), jnp.float32, -bound, bound)
    return params


if __name__ == "__main__":
    key = jax.random.PRNGKey(0)
    kx, kp = jax.random.split(key)

    N = 2
    x = jax.random.normal(kx, (N, 1, 28, 28), jnp.float32)   # MNIST-like NCHW input
    params = init_params(kp)

    out = jax.block_until_ready(fully_connected_mnist(x, params))
    ref = ref_forward(x, params)

    assert out.shape == (N, OUT)
    max_err = float(jnp.max(jnp.abs(out - ref)))
    # Tolerance covers end-to-end bf16 operands / bf16 output vs. the f32 HIGHEST-precision
    # reference; at these magnitudes the observed error is far below this bound.
    assert jnp.allclose(out, ref, atol=2e-2, rtol=2e-2), f"max abs err = {max_err}"
    print("KERNEL_OK")
</pallas_src>

<mosaic_0001>
module attributes {stable_mosaic.version = 11 : i64} {
  func.func @mlp_kernel(%arg0: i32, %arg1: memref<8x784xbf16, #tpu.memory_space<vmem>>, %arg2: memref<784x256xbf16, #tpu.memory_space<vmem>>, %arg3: memref<1x256xf32, #tpu.memory_space<vmem>>, %arg4: memref<256x128xbf16, #tpu.memory_space<vmem>>, %arg5: memref<1x128xf32, #tpu.memory_space<vmem>>, %arg6: memref<128x64xbf16, #tpu.memory_space<vmem>>, %arg7: memref<1x64xf32, #tpu.memory_space<vmem>>, %arg8: memref<64x128xbf16, #tpu.memory_space<vmem>>, %arg9: memref<1x128xf32, #tpu.memory_space<vmem>>, %arg10: memref<8x128xbf16, #tpu.memory_space<vmem>>) attributes {dimension_semantics = [#tpu.dimension_semantics<parallel>], iteration_bounds = array<i64: 1>, scalar_prefetch = 0 : i64, scratch_operands = 0 : i64, tpu.core_type = #tpu.core_type<tc>, window_params = [{transform_indices = @transform_0, window_bounds = array<i64: 8, 784>}, {pipeline_mode = #tpu.pipeline_mode<synchronous>, transform_indices = @transform_1, window_bounds = array<i64: 784, 256>}, {pipeline_mode = #tpu.pipeline_mode<synchronous>, transform_indices = @transform_2, window_bounds = array<i64: 1, 256>}, {pipeline_mode = #tpu.pipeline_mode<synchronous>, transform_indices = @transform_3, window_bounds = array<i64: 256, 128>}, {pipeline_mode = #tpu.pipeline_mode<synchronous>, transform_indices = @transform_4, window_bounds = array<i64: 1, 128>}, {pipeline_mode = #tpu.pipeline_mode<synchronous>, transform_indices = @transform_5, window_bounds = array<i64: 128, 64>}, {pipeline_mode = #tpu.pipeline_mode<synchronous>, transform_indices = @transform_6, window_bounds = array<i64: 1, 64>}, {pipeline_mode = #tpu.pipeline_mode<synchronous>, transform_indices = @transform_7, window_bounds = array<i64: 64, 128>}, {pipeline_mode = #tpu.pipeline_mode<synchronous>, transform_indices = @transform_8, window_bounds = array<i64: 1, 128>}, {transform_indices = @transform_9, window_bounds = array<i64: 8, 128>}]} {
    %c0 = arith.constant 0 : index
    %c0_0 = arith.constant 0 : index
    %0 = vector.load %arg1[%c0, %c0_0] : memref<8x784xbf16, #tpu.memory_space<vmem>>, vector<8x784xbf16>
    %c0_1 = arith.constant 0 : index
    %c0_2 = arith.constant 0 : index
    %1 = vector.load %arg2[%c0_1, %c0_2] : memref<784x256xbf16, #tpu.memory_space<vmem>>, vector<784x256xbf16>
    %cst = arith.constant dense<0.000000e+00> : vector<8x256xf32>
    %2 = tpu.matmul %0, %1, %cst {dimension_numbers = #tpu.dot_dimension_numbers<[1], [0], [0], [1], [0, 0, 1, 1], [], []>} : vector<8x784xbf16>, vector<784x256xbf16>, vector<8x256xf32> -> vector<8x256xf32>
    %c0_3 = arith.constant 0 : index
    %c0_4 = arith.constant 0 : index
    %3 = vector.load %arg3[%c0_3, %c0_4] : memref<1x256xf32, #tpu.memory_space<vmem>>, vector<1x256xf32>
    %4 = vector.broadcast %3 : vector<1x256xf32> to vector<8x256xf32>
    %5 = arith.addf %2, %4 : vector<8x256xf32>
    %cst_5 = arith.constant 0.000000e+00 : f32
    %6 = vector.broadcast %cst_5 : f32 to vector<8x256xf32>
    %7 = arith.maximumf %5, %6 : vector<8x256xf32>
    %8 = arith.truncf %7 : vector<8x256xf32> to vector<8x256xbf16>
    %c0_6 = arith.constant 0 : index
    %c0_7 = arith.constant 0 : index
    %9 = vector.load %arg4[%c0_6, %c0_7] : memref<256x128xbf16, #tpu.memory_space<vmem>>, vector<256x128xbf16>
    %cst_8 = arith.constant dense<0.000000e+00> : vector<8x128xf32>
    %10 = tpu.matmul %8, %9, %cst_8 {dimension_numbers = #tpu.dot_dimension_numbers<[1], [0], [0], [1], [0, 0, 1, 1], [], []>} : vector<8x256xbf16>, vector<256x128xbf16>, vector<8x128xf32> -> vector<8x128xf32>
    %c0_9 = arith.constant 0 : index
    %c0_10 = arith.constant 0 : index
    %11 = vector.load %arg5[%c0_9, %c0_10] : memref<1x128xf32, #tpu.memory_space<vmem>>, vector<1x128xf32>
    %12 = vector.broadcast %11 : vector<1x128xf32> to vector<8x128xf32>
    %13 = arith.addf %10, %12 : vector<8x128xf32>
    %cst_11 = arith.constant 0.000000e+00 : f32
    %14 = vector.broadcast %cst_11 : f32 to vector<8x128xf32>
    %15 = arith.maximumf %13, %14 : vector<8x128xf32>
    %16 = arith.truncf %15 : vector<8x128xf32> to vector<8x128xbf16>
    %c0_12 = arith.constant 0 : index
    %c0_13 = arith.constant 0 : index
    %17 = vector.load %arg6[%c0_12, %c0_13] : memref<128x64xbf16, #tpu.memory_space<vmem>>, vector<128x64xbf16>
    %cst_14 = arith.constant dense<0.000000e+00> : vector<8x64xf32>
    %18 = tpu.matmul %16, %17, %cst_14 {dimension_numbers = #tpu.dot_dimension_numbers<[1], [0], [0], [1], [0, 0, 1, 1], [], []>} : vector<8x128xbf16>, vector<128x64xbf16>, vector<8x64xf32> -> vector<8x64xf32>
    %c0_15 = arith.constant 0 : index
    %c0_16 = arith.constant 0 : index
    %19 = vector.load %arg7[%c0_15, %c0_16] : memref<1x64xf32, #tpu.memory_space<vmem>>, vector<1x64xf32>
    %20 = vector.broadcast %19 : vector<1x64xf32> to vector<8x64xf32>
    %21 = arith.addf %18, %20 : vector<8x64xf32>
    %cst_17 = arith.constant 0.000000e+00 : f32
    %22 = vector.broadcast %cst_17 : f32 to vector<8x64xf32>
    %23 = arith.maximumf %21, %22 : vector<8x64xf32>
    %24 = arith.truncf %23 : vector<8x64xf32> to vector<8x64xbf16>
    %c0_18 = arith.constant 0 : index
    %c0_19 = arith.constant 0 : index
    %25 = vector.load %arg8[%c0_18, %c0_19] : memref<64x128xbf16, #tpu.memory_space<vmem>>, vector<64x128xbf16>
    %cst_20 = arith.constant dense<0.000000e+00> : vector<8x128xf32>
    %26 = tpu.matmul %24, %25, %cst_20 {dimension_numbers = #tpu.dot_dimension_numbers<[1], [0], [0], [1], [0, 0, 1, 1], [], []>} : vector<8x64xbf16>, vector<64x128xbf16>, vector<8x128xf32> -> vector<8x128xf32>
    %c0_21 = arith.constant 0 : index
    %c0_22 = arith.constant 0 : index
    %27 = vector.load %arg9[%c0_21, %c0_22] : memref<1x128xf32, #tpu.memory_space<vmem>>, vector<1x128xf32>
    %28 = vector.broadcast %27 : vector<1x128xf32> to vector<8x128xf32>
    %29 = arith.addf %26, %28 : vector<8x128xf32>
    %30 = arith.truncf %29 : vector<8x128xf32> to vector<8x128xbf16>
    %c0_23 = arith.constant 0 : index
    %c0_24 = arith.constant 0 : index
    %31 = vector.load %arg10[%c0_23, %c0_24] : memref<8x128xbf16, #tpu.memory_space<vmem>>, vector<8x128xbf16>
    tpu.vector_store %arg10[%c0_23, %c0_24], %30 {strides = array<i32>} : memref<8x128xbf16, #tpu.memory_space<vmem>>, vector<8x128xbf16>,
    return
  }
  func.func @transform_0(%arg0: i32) -> (i32, i32) {
    %c0_i32 = arith.constant 0 : i32
    %c0_i32_0 = arith.constant 0 : i32
    return %arg0, %c0_i32 : i32, i32
  }
  func.func @transform_1(%arg0: i32) -> (i32, i32) {
    %c0_i32 = arith.constant 0 : i32
    %c0_i32_0 = arith.constant 0 : i32
    %c0_i32_1 = arith.constant 0 : i32
    return %c0_i32, %c0_i32_0 : i32, i32
  }
  func.func @transform_2(%arg0: i32) -> (i32, i32) {
    %c0_i32 = arith.constant 0 : i32
    %c0_i32_0 = arith.constant 0 : i32
    %c0_i32_1 = arith.constant 0 : i32
    return %c0_i32, %c0_i32_0 : i32, i32
  }
  func.func @transform_3(%arg0: i32) -> (i32, i32) {
    %c0_i32 = arith.constant 0 : i32
    %c0_i32_0 = arith.constant 0 : i32
    %c0_i32_1 = arith.constant 0 : i32
    return %c0_i32, %c0_i32_0 : i32, i32
  }
  func.func @transform_4(%arg0: i32) -> (i32, i32) {
    %c0_i32 = arith.constant 0 : i32
    %c0_i32_0 = arith.constant 0 : i32
    %c0_i32_1 = arith.constant 0 : i32
    return %c0_i32, %c0_i32_0 : i32, i32
  }
  func.func @transform_5(%arg0: i32) -> (i32, i32) {
    %c0_i32 = arith.constant 0 : i32
    %c0_i32_0 = arith.constant 0 : i32
    %c0_i32_1 = arith.constant 0 : i32
    return %c0_i32, %c0_i32_0 : i32, i32
  }
  func.func @transform_6(%arg0: i32) -> (i32, i32) {
    %c0_i32 = arith.constant 0 : i32
    %c0_i32_0 = arith.constant 0 : i32
    %c0_i32_1 = arith.constant 0 : i32
    return %c0_i32, %c0_i32_0 : i32, i32
  }
  func.func @transform_7(%arg0: i32) -> (i32, i32) {
    %c0_i32 = arith.constant 0 : i32
    %c0_i32_0 = arith.constant 0 : i32
    %c0_i32_1 = arith.constant 0 : i32
    return %c0_i32, %c0_i32_0 : i32, i32
  }
  func.func @transform_8(%arg0: i32) -> (i32, i32) {
    %c0_i32 = arith.constant 0 : i32
    %c0_i32_0 = arith.constant 0 : i32
    %c0_i32_1 = arith.constant 0 : i32
    return %c0_i32, %c0_i32_0 : i32, i32
  }
  func.func @transform_9(%arg0: i32) -> (i32, i32) {
    %c0_i32 = arith.constant 0 : i32
    %c0_i32_0 = arith.constant 0 : i32
    return %arg0, %c0_i32 : i32, i32
  }
}

</mosaic_0001>

<bundles_post_ra>
// kernel: tpu_custom_call.1
= control target key start
LH: loop header
LB: loop body
LE: loop exit
PB: predicated region body
PF: predicated region fallthrough
CT: control target
= control target key end

     0   :  { %14 = vsyncpa [#allocation3], 0  ;;  %s1917_s0 = inlined_call_operand.vmem [shape: bf16[8,784], index: 0, kind: input, shape index: {}]   ;;  %s1918_s1 = inlined_call_operand.hbm [shape: bf16[784,256], index: 1, kind: input, shape index: {}]   ;;  %s1919_s2 = inlined_call_operand.vmem [shape: f32[1,256], index: 2, kind: input, shape index: {}]   ;;  %s1920_s3 = inlined_call_operand.hbm [shape: bf16[256,128], index: 3, kind: input, shape index: {}]   ;;  %s1921_s4 = inlined_call_operand.vmem [shape: f32[1,128], index: 4, kind: input, shape index: {}]   ;;  %s1922_s5 = inlined_call_operand.vmem [shape: bf16[128,64], index: 5, kind: input, shape index: {}]   ;;  %s1923_s6 = inlined_call_operand.vmem [shape: f32[1,64], index: 6, kind: input, shape index: {}]   ;;  %s1924_s7 = inlined_call_operand.vmem [shape: bf16[64,128], index: 7, kind: input, shape index: {}]   ;;  %s1925_s8 = inlined_call_operand.vmem [shape: f32[1,128], index: 8, kind: input, shape index: {}]   ;;  %s1926_s9 = inlined_call_operand.hbm [shape: bf16[8,128], index: 9, kind: output, shape index: {}]  }
   0x1   :  { %15 = vsyncpa [#allocation6], 0 }
   0x2   :  { %16 = vsyncpa [#allocation4], 0  ;;  %s1735_s30 = smov [#allocation2]   ;;  %s1663_s13 = scalar_lea.hbm %s1918_s1, 12544 }
   0x3   :  { %s24_s10 = sshll.u32 %s1735_s30, 4  ;;  %p1664_p0 = scmp.ne.s32.totalorder %s1918_s1, %s1663_s13  ;;  %s25_s10 = int_to_ptr.vmem [resolvable:$true] %s24_s10 }
   0x4   :  { %p1667_p1 = scmp.lt.u32.totalorder %s1663_s13, %s1918_s1 }
   0x6   :  { %p1669_p2 = pnand %p1667_p1, %p1664_p0 }
   0x8   :  { %1672 = shalt.err (!%p1669_p2)
}
   0x9   :  { %s1673_s18 = scalar_lea.vmem %s25_s10, 12544  ;;  %p1678_p4 = scmp.lt.s32.totalorder %s25_s10, %s25_s10 }
   0xa   :  { %p1674_p3 = scmp.ne.s32.totalorder %s25_s10, %s1673_s18  ;;  %p1679_p5 = scmp.lt.s32.totalorder %s1673_s18, %s1673_s18 }
   0xc   :  { %p1680_p6 = por %p1679_p5, %p1678_p4 }
   0xe   :  { %p1681_p7 = pnand %p1680_p6, %p1674_p3 }
  0x10   :  { %1684 = shalt.err (!%p1681_p7)
}
  0x11   :  { %s1736_s19 = smov 128   ;;  %s1737_s20 = smov 8  }
  0x12   :  { %30 = dma.hbm_to_vmem [thread:$0]  %s1918_s1, 12544, %s25_s10, [#allocation3], %s1736_s19, %s1736_s19, %s1737_s20  }
  0x13   :  { %s1738_s23 = smov [#allocation5]   ;;  %s1685_s27 = scalar_lea.hbm %s1920_s3, 2048 }
  0x14   :  { %s38_s24 = sshll.u32 %s1738_s23, 4  ;;  %p1686_p8 = scmp.ne.s32.totalorder %s1920_s3, %s1685_s27  ;;  %s39_s24 = int_to_ptr.vmem [resolvable:$true] %s38_s24 }
  0x15   :  { %p1689_p9 = scmp.lt.u32.totalorder %s1685_s27, %s1920_s3 }
  0x17   :  { %p1691_p10 = pnand %p1689_p9, %p1686_p8 }
  0x19   :  { %1694 = shalt.err (!%p1691_p10)
}
  0x1a   :  { %s1695_s12 = scalar_lea.vmem %s39_s24, 2048  ;;  %p1700_p12 = scmp.lt.s32.totalorder %s39_s24, %s39_s24 }
  0x1b   :  { %p1696_p11 = scmp.ne.s32.totalorder %s39_s24, %s1695_s12  ;;  %p1701_p13 = scmp.lt.s32.totalorder %s1695_s12, %s1695_s12 }
  0x1d   :  { %p1702_p0 = por %p1701_p13, %p1700_p12 }
  0x1f   :  { %p1703_p1 = pnand %p1702_p0, %p1696_p11 }
  0x21   :  { %1706 = shalt.err (!%p1703_p1)
}
  0x22   :  { %s1739_s1 = smov 64   ;;  %s1740_s10 = smov 4  }
  0x23   :  { %44 = dma.hbm_to_vmem [thread:$0]  %s1920_s3, 2048, %s39_s24, [#allocation6], %s1739_s1, %s1739_s1, %s1740_s10  }
  0x24   :  { %1729 = dma.done.wait [#allocation3], 12544  }
  0x25   :  { %1730 = vsyncadd [#allocation3], 4294954752 }
  0x26   :  { %1731 = dma.done.wait [#allocation6], 2048  }
  0x27   :  { %1732 = vsyncadd [#allocation6], 4294965248  ;;  %v1481_v0 = vld [vmem:[#allocation2 + $0x104] ss:$8 sps:$4 sm:$0xff]   ;;  %v1483_v1 = vld [vmem:[#allocation2 + $0x100] ss:$8 sps:$4 sm:$0xff]  }
  0x28   :  { %735 = vmatprep.subr.bf16.mxu0 %v1481_v0  ;;  %v1484_v2 = vld [vmem:[#allocation2 + $0x114] ss:$8 sps:$4 sm:$0xff]   ;;  %v1486_v3 = vld [vmem:[#allocation2 + $0x110] ss:$8 sps:$4 sm:$0xff]   ;;  %v1487_v4 = vld [vmem:[#allocation2 + $0x124] ss:$8 sps:$4 sm:$0xff]  }
  0x29   :  { %736 = vmatpush1.bf16.msra.mxu0 %v1483_v1  ;;  %v1489_v5 = vld [vmem:[#allocation2 + $0x120] ss:$8 sps:$4 sm:$0xff]   ;;  %v1490_v6 = vld [vmem:[#allocation2 + $0x134] ss:$8 sps:$4 sm:$0xff]   ;;  %v1492_v7 = vld [vmem:[#allocation2 + $0x130] ss:$8 sps:$4 sm:$0xff]  }
  0x2a   :  { %737 = vmatprep.subr.bf16.mxu0 %v1484_v2  ;;  %v1493_v8 = vld [vmem:[#allocation2 + $0x144] ss:$8 sps:$4 sm:$0xff]   ;;  %v1495_v9 = vld [vmem:[#allocation2 + $0x140] ss:$8 sps:$4 sm:$0xff]   ;;  %v1496_v10 = vld [vmem:[#allocation2 + $0x154] ss:$8 sps:$4 sm:$0xff]  }
  0x2b   :  { %v1498_v11 = vld [vmem:[#allocation2 + $0x150] ss:$8 sps:$4 sm:$0xff]   ;;  %v1499_v12 = vld [vmem:[#allocation2 + $0x164] ss:$8 sps:$4 sm:$0xff]   ;;  %v1501_v15 = vld [vmem:[#allocation2 + $0x160] ss:$8 sps:$4 sm:$0xff]  }
  0x2c   :  { %v1822_v13 = vld [vmem:[%s1917_s0 + $0x8] sm:$0xff]  ;;  %v1502_v16 = vld [vmem:[#allocation2 + $0x174] ss:$8 sps:$4 sm:$0xff]   ;;  %v1504_v18 = vld [vmem:[#allocation2 + $0x170] ss:$8 sps:$4 sm:$0xff]   ;;  %vm690_vm0 = vcmask 130048  }
  0x2d   :  { %738 = vmatpush1.bf16.msra.mxu0 %v1486_v3  ;;  %v1256_v14 = vcombine.high %v1822_v13, %v1822_v13  ;;  %v1537_v17 = vld [vmem:[#allocation2 + $0x4] ss:$8 sps:$4 sm:$0xff]   ;;  %v1542_v19 = vld [vmem:[#allocation2] ss:$8 sps:$4 sm:$0xff]   ;;  %v1543_v20 = vld [vmem:[#allocation2 + $0x14] ss:$8 sps:$4 sm:$0xff]   ;;  %v1255_v57 = vcombine.low %v1822_v13, %v1822_v13 }
  0x2e   :  { %739 = vmatprep.subr.bf16.mxu0 %v1487_v4  ;;  %694 = vmatprep.subr.bf16.mxu1 %v1537_v17  ;;  %v1505_v21 = vld [vmem:[#allocation2 + $0x184] ss:$8 sps:$4 sm:$0xff]   ;;  %v1548_v22 = vld [vmem:[#allocation2 + $0x10] ss:$8 sps:$4 sm:$0xff]   ;;  %v1507_v24 = vld [vmem:[#allocation2 + $0x180] ss:$8 sps:$4 sm:$0xff]  }
  0x2f   :  { %767 = vmatprep.mubr.bf16.mxu0 %v1256_v14  ;;  %695 = vmatpush1.bf16.msra.mxu1 %v1542_v19  ;;  %v1549_v23 = vld [vmem:[#allocation2 + $0x24] ss:$8 sps:$4 sm:$0xff]   ;;  %v1508_v25 = vld [vmem:[#allocation2 + $0x194] ss:$8 sps:$4 sm:$0xff]   ;;  %v1554_v26 = vld [vmem:[#allocation2 + $0x20] ss:$8 sps:$4 sm:$0xff]  }
  0x30   :  { %696 = vmatprep.subr.bf16.mxu1 %v1543_v20  ;;  %v1555_v27 = vld [vmem:[#allocation2 + $0x34] ss:$8 sps:$4 sm:$0xff]   ;;  %v1510_v28 = vld [vmem:[#allocation2 + $0x190] ss:$8 sps:$4 sm:$0xff]   ;;  %v1511_v29 = vld [vmem:[#allocation2 + $0x1a4] ss:$8 sps:$4 sm:$0xff]  }
  0x31   :  { %740 = vmatpush1.bf16.msra.mxu0 %v1489_v5  ;;  %v1560_v30 = vld [vmem:[#allocation2 + $0x30] ss:$8 sps:$4 sm:$0xff]   ;;  %v1561_v31 = vld [vmem:[#allocation2 + $0x44] ss:$8 sps:$4 sm:$0xff]   ;;  %v1513_v32 = vld [vmem:[#allocation2 + $0x1a0] ss:$8 sps:$4 sm:$0xff]  }
  0x32   :  { %741 = vmatprep.subr.bf16.mxu0 %v1490_v6  ;;  %v1514_v33 = vld [vmem:[#allocation2 + $0x1b4] ss:$8 sps:$4 sm:$0xff]   ;;  %v1566_v34 = vld [vmem:[#allocation2 + $0x40] ss:$8 sps:$4 sm:$0xff]   ;;  %v1516_v36 = vld [vmem:[#allocation2 + $0x1b0] ss:$8 sps:$4 sm:$0xff]  }
  0x33   :  { %697 = vmatpush1.bf16.msra.mxu1 %v1548_v22  ;;  %v1567_v35 = vld [vmem:[#allocation2 + $0x54] ss:$8 sps:$4 sm:$0xff]   ;;  %v1517_v37 = vld [vmem:[#allocation2 + $0x1c4] ss:$8 sps:$4 sm:$0xff]   ;;  %v1572_v38 = vld [vmem:[#allocation2 + $0x50] ss:$8 sps:$4 sm:$0xff]  }
  0x34   :  { %698 = vmatprep.subr.bf16.mxu1 %v1549_v23  ;;  %v1573_v39 = vld [vmem:[#allocation2 + $0x64] ss:$8 sps:$4 sm:$0xff]   ;;  %v1519_v40 = vld [vmem:[#allocation2 + $0x1c0] ss:$8 sps:$4 sm:$0xff]   ;;  %v1520_v41 = vld [vmem:[#allocation2 + $0x1d4] ss:$8 sps:$4 sm:$0xff]  }
  0x35   :  { %742 = vmatpush1.bf16.msra.mxu0 %v1492_v7  ;;  %v1578_v42 = vld [vmem:[#allocation2 + $0x60] ss:$8 sps:$4 sm:$0xff]   ;;  %v1579_v43 = vld [vmem:[#allocation2 + $0x74] ss:$8 sps:$4 sm:$0xff]   ;;  %v1522_v44 = vld [vmem:[#allocation2 + $0x1d0] ss:$8 sps:$4 sm:$0xff]  }
  0x36   :  { %743 = vmatprep.subr.bf16.mxu0 %v1493_v8  ;;  %v1523_v45 = vld [vmem:[#allocation2 + $0x1e4] ss:$8 sps:$4 sm:$0xff]   ;;  %v1584_v46 = vld [vmem:[#allocation2 + $0x70] ss:$8 sps:$4 sm:$0xff]   ;;  %v1525_v48 = vld [vmem:[#allocation2 + $0x1e0] ss:$8 sps:$4 sm:$0xff]  }
  0x37   :  { %699 = vmatpush1.bf16.msra.mxu1 %v1554_v26  ;;  %v1585_v47 = vld [vmem:[#allocation2 + $0x84] ss:$8 sps:$4 sm:$0xff]   ;;  %v1526_v49 = vld [vmem:[#allocation2 + $0x1f4] ss:$8 sps:$4 sm:$0xff]   ;;  %v1590_v50 = vld [vmem:[#allocation2 + $0x80] ss:$8 sps:$4 sm:$0xff]  }
  0x38   :  { %700 = vmatprep.subr.bf16.mxu1 %v1555_v27  ;;  %v1591_v51 = vld [vmem:[#allocation2 + $0x94] ss:$8 sps:$4 sm:$0xff]   ;;  %v1528_v52 = vld [vmem:[#allocation2 + $0x1f0] ss:$8 sps:$4 sm:$0xff]   ;;  %v1533_v53 = vld [vmem:[#allocation2 + $0x204] ss:$8 sps:$4 sm:$0xff]  }
  0x39   :  { %744 = vmatpush1.bf16.msra.mxu0 %v1495_v9  ;;  %v1596_v54 = vld [vmem:[#allocation2 + $0x90] ss:$8 sps:$4 sm:$0xff]   ;;  %v1597_v55 = vld [vmem:[#allocation2 + $0xa4] ss:$8 sps:$4 sm:$0xff]   ;;  %v1531_v58 = vld [vmem:[#allocation2 + $0x200] ss:$8 sps:$4 sm:$0xff]  }
  0x3a   :  { %745 = vmatprep.subr.bf16.mxu0 %v1496_v10  ;;  %v1829_v56 = vld [vmem:[%s1917_s0 + $0x10] sm:$0xff]  ;;  %v1602_v61 = vld [vmem:[#allocation2 + $0xa0] ss:$8 sps:$4 sm:$0xff]   ;;  %v1541_v1 = vld [vmem:[#allocation2 + $0x224] ss:$8 sps:$4 sm:$0xff]   ;;  %vm1743_vm1 = vmmov 0  }
  0x3b   :  { %701 = vmatpush1.bf16.msra.mxu1 %v1560_v30  ;;  %v1258_v59 = vcombine.high %v1829_v56, %v1829_v56  ;;  %v1536_v60 = vld [vmem:[#allocation2 + $0x214] ss:$8 sps:$4 sm:$0xff]   ;;  %v1534_v63 = vld [vmem:[#allocation2 + $0x210] ss:$8 sps:$4 sm:$0xff]   ;;  %v62_v0 = vld [vmem:[%s1917_s0] sm:$0xff]  ;;  %vm1191_vm2 = vcmask 523264  }
  0x3c   :  { %702 = vmatprep.subr.bf16.mxu1 %v1561_v31  ;;  %v1603_v62 = vld [vmem:[#allocation2 + $0xb4] ss:$8 sps:$4 sm:$0xff]   ;;  %v1254_v2 = vcombine.high %v62_v0, %v62_v0  ;;  %v1608_v3 = vld [vmem:[#allocation2 + $0xb0] ss:$8 sps:$4 sm:$0xff]   ;;  %v1609_v4 = vld [vmem:[#allocation2 + $0xc4] ss:$8 sps:$4 sm:$0xff]  }
  0x3d   :  { %746 = vmatpush1.bf16.msra.mxu0 %v1498_v11  ;;  %v1539_v5 = vld [vmem:[#allocation2 + $0x220] ss:$8 sps:$4 sm:$0xff]   ;;  %v1547_v6 = vld [vmem:[#allocation2 + $0x234] ss:$8 sps:$4 sm:$0xff]   ;;  %v1545_v9 = vld [vmem:[#allocation2 + $0x230] ss:$8 sps:$4 sm:$0xff]  }
  0x3e   :  { %747 = vmatprep.subr.bf16.mxu0 %v1499_v12  ;;  %726 = vmatprep.mubr.bf16.mxu1 %v1254_v2  ;;  %v1614_v7 = vld [vmem:[#allocation2 + $0xc0] ss:$8 sps:$4 sm:$0xff]   ;;  %v1615_v8 = vld [vmem:[#allocation2 + $0xd4] ss:$8 sps:$4 sm:$0xff]   ;;  %v1553_v10 = vld [vmem:[#allocation2 + $0x244] ss:$8 sps:$4 sm:$0xff]   ;;  %v166_v2 = vlaneseq }
  0x3f   :  { %703 = vmatpush1.bf16.msra.mxu1 %v1566_v34  ;;  %v1620_v11 = vld [vmem:[#allocation2 + $0xd0] ss:$8 sps:$4 sm:$0xff]   ;;  %v1551_v12 = vld [vmem:[#allocation2 + $0x240] ss:$8 sps:$4 sm:$0xff]   ;;  %v1623_v13 = vld [vmem:[#allocation2 + $0xe4] ss:$8 sps:$4 sm:$0xff]  }
  0x40   :  { %704 = vmatprep.subr.bf16.mxu1 %v1567_v35  ;;  %v1559_v14 = vld [vmem:[#allocation2 + $0x254] ss:$8 sps:$4 sm:$0xff]   ;;  %v1557_v17 = vld [vmem:[#allocation2 + $0x250] ss:$8 sps:$4 sm:$0xff]   ;;  %v1577_v27 = vld [vmem:[#allocation2 + $0x284] ss:$8 sps:$4 sm:$0xff]  }
  0x41   :  { %748 = vmatpush1.bf16.msra.mxu0 %v1501_v15  ;;  %v1628_v15 = vld [vmem:[#allocation2 + $0xe0] ss:$8 sps:$4 sm:$0xff]   ;;  %v1631_v19 = vld [vmem:[#allocation2 + $0xf0] ss:$8 sps:$4 sm:$0xff]   ;;  %v1571_v22 = vld [vmem:[#allocation2 + $0x274] ss:$8 sps:$4 sm:$0xff]  }
  0x42   :  { %749 = vmatprep.subr.bf16.mxu0 %v1502_v16  ;;  %v1629_v16 = vld [vmem:[#allocation2 + $0xf4] ss:$8 sps:$4 sm:$0xff]   ;;  %v1569_v26 = vld [vmem:[#allocation2 + $0x270] ss:$8 sps:$4 sm:$0xff]   ;;  %v1575_v30 = vld [vmem:[#allocation2 + $0x280] ss:$8 sps:$4 sm:$0xff]  }
  0x43   :  { %705 = vmatpush1.bf16.msra.mxu1 %v1572_v38  ;;  %v1635_v20 = vld [vmem:[#allocation5 + $0x40] sm:$0xff]   ;;  %v1589_v35 = vld [vmem:[#allocation2 + $0x2a4] ss:$8 sps:$4 sm:$0xff]   ;;  %v1587_v38 = vld [vmem:[#allocation2 + $0x2a0] ss:$8 sps:$4 sm:$0xff]  }
  0x44   :  { %706 = vmatprep.subr.bf16.mxu1 %v1573_v39  ;;  %v1636_v23 = vld [vmem:[#allocation5] sm:$0xff]  }
  0x45   :  { %750 = vmatpush1.bf16.msra.mxu0 %v1504_v18  ;;  %v1565_v18 = vld [vmem:[#allocation2 + $0x264] ss:$8 sps:$4 sm:$0xff]   ;;  %v1583_v31 = vld [vmem:[#allocation2 + $0x294] ss:$8 sps:$4 sm:$0xff]   ;;  %v1581_v34 = vld [vmem:[#allocation2 + $0x290] ss:$8 sps:$4 sm:$0xff]  }
  0x46   :  { %751 = vmatprep.subr.bf16.mxu0 %v1505_v21  ;;  %v1563_v21 = vld [vmem:[#allocation2 + $0x260] ss:$8 sps:$4 sm:$0xff]   ;;  %v1595_v39 = vld [vmem:[#allocation2 + $0x2b4] ss:$8 sps:$4 sm:$0xff]  }
  0x47   :  { %707 = vmatpush1.bf16.msra.mxu1 %v1578_v42  ;;  %v1601_v42 = vld [vmem:[#allocation2 + $0x2c4] ss:$8 sps:$4 sm:$0xff]  }
  0x48   :  { %708 = vmatprep.subr.bf16.mxu1 %v1579_v43  ;;  %v1599_v43 = vld [vmem:[#allocation2 + $0x2c0] ss:$8 sps:$4 sm:$0xff]  }
  0x49   :  { %752 = vmatpush1.bf16.msra.mxu0 %v1507_v24  ;;  %v1253_v24 = vcombine.low %v62_v0, %v62_v0 }
  0x4a   :  { %753 = vmatprep.subr.bf16.mxu0 %v1508_v25  ;;  %v1637_v25 = vld [vmem:[#allocation5 + $0x48] sm:$0xff]  }
  0x4b   :  { %709 = vmatpush1.bf16.msra.mxu1 %v1584_v46  ;;  %v1613_v46 = vld [vmem:[#allocation2 + $0x2e4] ss:$8 sps:$4 sm:$0xff]  }
  0x4c   :  { %710 = vmatprep.subr.bf16.mxu1 %v1585_v47  ;;  %v1611_v47 = vld [vmem:[#allocation2 + $0x2e0] ss:$8 sps:$4 sm:$0xff]  }
  0x4d   :  { %754 = vmatpush1.bf16.msra.mxu0 %v1510_v28  ;;  %v1638_v28 = vld [vmem:[#allocation5 + $0x8] sm:$0xff]  }
  0x4e   :  { %755 = vmatprep.subr.bf16.mxu0 %v1511_v29  ;;  %v1639_v29 = vld [vmem:[#allocation5 + $0x50] sm:$0xff]  }
  0x4f   :  { %711 = vmatpush1.bf16.msra.mxu1 %v1590_v50  ;;  %v1627_v50 = vld [vmem:[#allocation2 + $0x304] ss:$8 sps:$4 sm:$0xff]  }
  0x50   :  { %712 = vmatprep.subr.bf16.mxu1 %v1591_v51  ;;  %v1257_v51 = vcombine.low %v1829_v56, %v1829_v56  ;;  %v1649_v56 = vld [vmem:[#allocation5 + $0x78] sm:$0xff]  }
  0x51   :  { %756 = vmatpush1.bf16.msra.mxu0 %v1513_v32  ;;  %v1640_v32 = vld [vmem:[#allocation5 + $0x10] sm:$0xff]  }
  0x52   :  { %757 = vmatprep.subr.bf16.mxu0 %v1514_v33  ;;  %v1641_v33 = vld [vmem:[#allocation5 + $0x58] sm:$0xff]  }
  0x53   :  { %713 = vmatpush1.bf16.msra.mxu1 %v1596_v54  ;;  %v1634_v54 = vld [vmem:[%s1917_s0 + $0x18] ss:$0 sps:$4 sm:$0xff]  }
  0x54   :  { %714 = vmatprep.subr.bf16.mxu1 %v1597_v55  ;;  %v1645_v55 = vld [vmem:[#allocation5 + $0x68] sm:$0xff]  }
  0x55   :  { %758 = vmatpush1.bf16.msra.mxu0 %v1516_v36  ;;  %v1642_v36 = vld [vmem:[#allocation5 + $0x18] sm:$0xff]  }
  0x56   :  { %759 = vmatprep.subr.bf16.mxu0 %v1517_v37  ;;  %v1643_v37 = vld [vmem:[#allocation5 + $0x60] sm:$0xff]  }
  0x57   :  { %715 = vmatpush1.bf16.msra.mxu1 %v1602_v61  ;;  %v1742_v61 = vmov 0.0  }
  0x58   :  { %716 = vmatprep.subr.bf16.mxu1 %v1603_v62 }
  0x59   :  { %760 = vmatpush1.bf16.msra.mxu0 %v1519_v40  ;;  %v1644_v40 = vld [vmem:[#allocation5 + $0x20] sm:$0xff]  }
  0x5a   :  { %761 = vmatprep.subr.bf16.mxu0 %v1520_v41  ;;  %v1593_v41 = vld [vmem:[#allocation2 + $0x2b0] ss:$8 sps:$4 sm:$0xff]  }
  0x5b   :  { %717 = vmatpush1.bf16.msra.mxu1 %v1608_v3  ;;  %v167_v3 = vshrl.u32 %v166_v2, 7 }
  0x5c   :  { %718 = vmatprep.subr.bf16.mxu1 %v1609_v4 }
  0x5d   :  { %762 = vmatpush1.bf16.msra.mxu0 %v1522_v44  ;;  %v1607_v44 = vld [vmem:[#allocation2 + $0x2d4] ss:$8 sps:$4 sm:$0xff]   ;;  %v168_v4 = vsub.s32 0, %v167_v3 }
  0x5e   :  { %763 = vmatprep.subr.bf16.mxu0 %v1523_v45  ;;  %v1605_v45 = vld [vmem:[#allocation2 + $0x2d0] ss:$8 sps:$4 sm:$0xff]  }
  0x5f   :  { %719 = vmatpush1.bf16.msra.mxu1 %v1614_v7 }
  0x60   :  { %720 = vmatprep.subr.bf16.mxu1 %v1615_v8 }
  0x61   :  { %764 = vmatpush1.bf16.msra.mxu0 %v1525_v48  ;;  %v1619_v48 = vld [vmem:[#allocation2 + $0x2f4] ss:$8 sps:$4 sm:$0xff]  }
  0x62   :  { %765 = vmatprep.subr.bf16.mxu0 %v1526_v49  ;;  %v1617_v49 = vld [vmem:[#allocation2 + $0x2f0] ss:$8 sps:$4 sm:$0xff]  }
  0x63   :  { %721 = vmatpush1.bf16.msra.mxu1 %v1620_v11 }
  0x64   :  { %722 = vmatprep.subr.bf16.mxu1 %v1623_v13 }
  0x65   :  { %766 = vmatpush1.bf16.msra.mxu0 %v1528_v52  ;;  %v1625_v52 = vld [vmem:[#allocation2 + $0x300] ss:$8 sps:$4 sm:$0xff]  }
  0x66   :  { %776 = vmatprep.subr.bf16.mxu0 %v1533_v53  ;;  %v1741_v53 = vmov 0  }
  0x67   :  { %723 = vmatpush1.bf16.msra.mxu1 %v1628_v15 }
  0x68   :  { %768 = vmatmul.mubr.bf16.vlgmr.msra.gmra.mrb[0].mxu0 %v1255_v57  ;;  %724 = vmatprep.subr.bf16.mxu1 %v1629_v16  ;;  %v1646_v57 = vld [vmem:[#allocation5 + $0x28] sm:$0xff]  }
  0x69   :  { %777 = vmatpush1.bf16.msra.mxu0 %v1531_v58  ;;  %808 = vmatprep.mubr.bf16.mxu0 %v1258_v59  ;;  %v1647_v58 = vld [vmem:[#allocation5 + $0x70] sm:$0xff]  }
  0x6a   :  { %778 = vmatprep.subr.bf16.mxu0 %v1536_v60  ;;  %v1648_v59 = vld [vmem:[#allocation5 + $0x30] sm:$0xff]   ;;  %v1650_v60 = vld [vmem:[#allocation5 + $0x38] sm:$0xff]  }
  0x6b   :  { %725 = vmatpush1.bf16.msra.mxu1 %v1631_v19 }
  0x6c   :  { %1391 = vmatprep.subr.bf16.mxu1 %v1635_v20  ;;  %v1651_v20 = vld [vmem:[%s1922_s5] sm:$0xff]  }
  0x6d   :  { %779 = vmatpush1.bf16.msra.mxu0 %v1534_v63 }
  0x6e   :  { %780 = vmatprep.subr.bf16.mxu0 %v1541_v1  ;;  %727 = vmatmul.mubr.bf16.vlgmr.msra.gmra.mrb[0].mxu1 %v1253_v24  ;;  %v1654_v24 = vld [vmem:[%s1922_s5 + $0x18] sm:$0xff]  }
  0x6f   :  { %1392 = vmatpush3.bf16.msra.mxu1 %v1636_v23  ;;  %v1653_v23 = vld [vmem:[%s1922_s5 + $0x10] sm:$0xff]  }
  0x70   :  { %1393 = vmatprep.subr.bf16.mxu1 %v1637_v25  ;;  %v1655_v25 = vld [vmem:[%s1922_s5 + $0x20] sm:$0xff]  }
  0x71   :  { %781 = vmatpush1.bf16.msra.mxu0 %v1539_v5  ;;  %v164_v5 = vld [vmem:[%s1919_s2] sm:$0x3] }
  0x72   :  { %782 = vmatprep.subr.bf16.mxu0 %v1547_v6  ;;  %v172_v6 = vsub.s32 1, %v167_v3  ;;  %v169_v7 = vrot.slane %v164_v5, %v168_v4 }
  0x73   :  { %1394 = vmatpush3.bf16.msra.mxu1 %v1638_v28  ;;  %v1658_v28 = vld [vmem:[%s1922_s5 + $0x38] sm:$0xff]  }
  0x74   :  { %1395 = vmatprep.subr.bf16.mxu1 %v1639_v29  ;;  %v173_v8 = vrot.slane %v164_v5, %v172_v6 }
  0x75   :  { %783 = vmatpush1.bf16.msra.mxu0 %v1545_v9 }
  0x76   :  { %784 = vmatprep.subr.bf16.mxu0 %v1553_v10 }
  0x77   :  { %1396 = vmatpush3.bf16.msra.mxu1 %v1640_v32 }
  0x78   :  { %1397 = vmatprep.subr.bf16.mxu1 %v1641_v33 }
  0x79   :  { %785 = vmatpush1.bf16.msra.mxu0 %v1551_v12 }
  0x7a   :  { %786 = vmatprep.subr.bf16.mxu0 %v1559_v14 }
  0x7b   :  { %1398 = vmatpush3.bf16.msra.mxu1 %v1642_v36 }
  0x7c   :  { %1399 = vmatprep.subr.bf16.mxu1 %v1643_v37  ;;  %v1659_v37 = vld [vmem:[%s1924_s7] sm:$0xff]  }
  0x7d   :  { %787 = vmatpush1.bf16.msra.mxu0 %v1557_v17 }
  0x7e   :  { %788 = vmatprep.subr.bf16.mxu0 %v1565_v18 }
  0x7f   :  { %1400 = vmatpush3.bf16.msra.mxu1 %v1644_v40  ;;  %v1661_v40 = vld [vmem:[%s1924_s7 + $0x10] sm:$0xff]  }
  0x80   :  { %1401 = vmatprep.subr.bf16.mxu1 %v1645_v55 }
  0x81   :  { %789 = vmatpush1.bf16.msra.mxu0 %v1563_v21 }
  0x82   :  { %790 = vmatprep.subr.bf16.mxu0 %v1571_v22  ;;  %v1652_v22 = vld [vmem:[%s1922_s5 + $0x8] sm:$0xff]  }
  0x83   :  { %1402 = vmatpush3.bf16.msra.mxu1 %v1646_v57 }
  0x84   :  { %1403 = vmatprep.subr.bf16.mxu1 %v1647_v58 }
  0x85   :  { %791 = vmatpush1.bf16.msra.mxu0 %v1569_v26  ;;  %v1656_v26 = vld [vmem:[%s1922_s5 + $0x28] sm:$0xff]  }
  0x86   :  { %792 = vmatprep.subr.bf16.mxu0 %v1577_v27  ;;  %v1657_v27 = vld [vmem:[%s1922_s5 + $0x30] sm:$0xff]  }
  0x87   :  { %1404 = vmatpush3.bf16.msra.mxu1 %v1648_v59 }
  0x88   :  { %1405 = vmatprep.subr.bf16.mxu1 %v1649_v56 }
  0x89   :  { %793 = vmatpush1.bf16.msra.mxu0 %v1575_v30  ;;  %v1359_v30 = vld [vmem:[%s1921_s4] ss:$0 sm:$0xff] }
  0x8a   :  { %794 = vmatprep.subr.bf16.mxu0 %v1583_v31 }
  0x8b   :  { %1406 = vmatpush3.bf16.msra.mxu1 %v1650_v60 }
  0x8c   :  { %1427 = vmatprep.subr.bf16.mxu1 %v1742_v61 }
  0x8d   :  { %795 = vmatpush1.bf16.msra.mxu0 %v1581_v34 }
  0x8e   :  { %796 = vmatprep.subr.bf16.mxu0 %v1589_v35 }
  0x91   :  { %797 = vmatpush1.bf16.msra.mxu0 %v1587_v38 }
  0x92   :  { %798 = vmatprep.subr.bf16.mxu0 %v1595_v39  ;;  %v1660_v39 = vld [vmem:[%s1924_s7 + $0x8] sm:$0xff]  }
  0x95   :  { %799 = vmatpush1.bf16.msra.mxu0 %v1593_v41  ;;  %v1662_v41 = vld [vmem:[%s1924_s7 + $0x18] sm:$0xff]   ;;  %s1744_s7 = smov [#allocation7]  }
  0x96   :  { %800 = vmatprep.subr.bf16.mxu0 %v1601_v42  ;;  %v1376_v42 = vld [vmem:[%s1923_s6] ss:$0 sm:$0xff]  ;;  %s1243_s25 = sshll.u32 %s1744_s7, 4  ;;  %s1244_s25 = int_to_ptr.vmem [resolvable:$true] %s1243_s25 }
  0x97   :  { %s1707_s6 = scalar_lea.vmem %s1244_s25, 64  ;;  %p1712_p3 = scmp.lt.s32.totalorder %s1244_s25, %s1244_s25 }
  0x98   :  { %p1708_p2 = scmp.ne.s32.totalorder %s1244_s25, %s1707_s6  ;;  %p1713_p4 = scmp.lt.s32.totalorder %s1707_s6, %s1707_s6 }
  0x99   :  { %801 = vmatpush1.bf16.msra.mxu0 %v1599_v43 }
  0x9a   :  { %802 = vmatprep.subr.bf16.mxu0 %v1607_v44  ;;  %p1714_p5 = por %p1713_p4, %p1712_p3 }
  0x9c   :  { %p1715_p6 = pnand %p1714_p5, %p1708_p2 }
  0x9d   :  { %803 = vmatpush1.bf16.msra.mxu0 %v1605_v45 }
  0x9e   :  { %804 = vmatprep.subr.bf16.mxu0 %v1613_v46 }
  0xa1   :  { %805 = vmatpush1.bf16.msra.mxu0 %v1611_v47 }
  0xa2   :  { %806 = vmatprep.subr.bf16.mxu0 %v1619_v48 }
  0xa5   :  { %807 = vmatpush1.bf16.msra.mxu0 %v1617_v49 }
  0xa6   :  { %817 = vmatprep.subr.bf16.mxu0 %v1627_v50  ;;  %v1385_v50 = vld [vmem:[%s1925_s8] ss:$0 sm:$0xff] }
  0xa8   :  { %809 = vmatmul.mubr.bf16.vlgmr.msra.gmra.mrb[0].mxu0 %v1257_v51 }
  0xa9   :  { %818 = vmatpush1.bf16.msra.mxu0 %v1625_v52  ;;  %849 = vmatprep.mubr.bf16.mxu0 %v1741_v53 }
  0xb4   :  { %1358 = vmatmul.mubr.msk.bf16.vlgmr.msra.gmra.mrb[0].mxu0 %vm690_vm0, %v1634_v54 }
 0x141   :  { %v728_v62 = vpop.f32.mrb[0].mxu1 }
 0x142   :  { %v730_v63 = vpop.f32.mrb[1].mxu1  ;;  %v729_v9 = vadd.f32 %v728_v62, %v169_v7 }
 0x143   :  { %v732_v0 = vpop.f32.mrb[2].mxu1  ;;  %v731_v10 = vadd.f32 %v730_v63, %v173_v8 }
 0x144   :  { %v733_v1 = vpop.f32.mrb[3].mxu1 }
 0x187   :  { %v851_v11 = vpop.f32.mrb[0].mxu0 }
 0x188   :  { %v1460_v12 = vadd.f32 %v851_v11, %v729_v9  ;;  %v853_v13 = vpop.f32.mrb[1].mxu0 }
 0x189   :  { %v1462_v14 = vadd.f32 %v853_v13, %v731_v10  ;;  %v855_v15 = vpop.f32.mrb[2].mxu0 }
 0x18a   :  { %v858_v16 = vmax.f32 %v1460_v12, 0.0  ;;  %v856_v17 = vpop.f32.mrb[3].mxu0 }
 0x18b   :  { %v859_v18 = vmax.f32 %v1462_v14, 0.0 }
 0x18c   :  { %v860_v21 = vpack.c.bf16 %v858_v16, %v858_v16 }
 0x18d   :  { %v861_v19 = vpack.c.bf16 %v859_v18, %v859_v18 }
 0x18f   :  { %1029 = vmatprep.mubr.bf16.mxu1 %v861_v19 }
 0x190   :  { %1030 = vmatmul.mubr.bf16.vlgmr.msra.gmra.mrb[4].mxu1 %v860_v21 }
 0x191   :  { %1428 = vmatpush3.bf16.msra.mxu1 %v1651_v20  ;;  %1443 = vmatprep.mubr.msk.bf16.mxu1 %vm1743_vm1, %v1742_v61 }
 0x192   :  { %1429 = vmatprep.subr.bf16.mxu1 %v1742_v61 }
 0x195   :  { %1430 = vmatpush3.bf16.msra.mxu1 %v1652_v22 }
 0x196   :  { %1431 = vmatprep.subr.bf16.mxu1 %v1742_v61 }
 0x199   :  { %1432 = vmatpush3.bf16.msra.mxu1 %v1653_v23 }
 0x19a   :  { %1433 = vmatprep.subr.bf16.mxu1 %v1742_v61 }
 0x19d   :  { %1434 = vmatpush3.bf16.msra.mxu1 %v1654_v24 }
 0x19e   :  { %1435 = vmatprep.subr.bf16.mxu1 %v1742_v61 }
 0x1a1   :  { %1436 = vmatpush3.bf16.msra.mxu1 %v1655_v25 }
 0x1a2   :  { %1437 = vmatprep.subr.bf16.mxu1 %v1742_v61 }
 0x1a5   :  { %1438 = vmatpush3.bf16.msra.mxu1 %v1656_v26 }
 0x1a6   :  { %1439 = vmatprep.subr.bf16.mxu1 %v1742_v61 }
 0x1a9   :  { %1440 = vmatpush3.bf16.msra.mxu1 %v1657_v27 }
 0x1aa   :  { %1441 = vmatprep.subr.bf16.mxu1 %v1742_v61 }
 0x1ad   :  { %1442 = vmatpush3.bf16.msra.mxu1 %v1658_v28 }
 0x1ae   :  { %1447 = vmatprep.subr.bf16.mxu1 %v1742_v61 }
 0x263   :  { %v1407_v29 = vpop.f32.mrb[4].mxu1 }
 0x264   :  { %v1408_v31 = vpop.f32.mrb[5].mxu1 }
 0x265   :  { %v1409_v32 = vadd.f32 %v1408_v31, %v1407_v29  ;;  %v1410_v33 = vpop.f32.mrb[6].mxu1 }
 0x266   :  { %v1411_v34 = vpop.f32.mrb[7].mxu1 }
 0x267   :  { %v1032_v35 = vadd.f32 %v1409_v32, %v1359_v30 }
 0x269   :  { %v1037_v36 = vmax.f32 %v1032_v35, 0.0 }
 0x26b   :  { %v1038_v38 = vpack.c.bf16 %v1037_v36, %v1037_v36 }
 0x26d   :  { %1444 = vmatmul.mubr.bf16.vlgmr.msra.gmra.mrb[8].mxu1 %v1038_v38 }
 0x26e   :  { %1448 = vmatpush3.bf16.msra.mxu1 %v1659_v37  ;;  %1455 = vmatprep.mubr.msk.bf16.mxu1 %vm1743_vm1, %v1742_v61 }
 0x26f   :  { %1449 = vmatprep.subr.bf16.mxu1 %v1742_v61 }
 0x272   :  { %1450 = vmatpush3.bf16.msra.mxu1 %v1660_v39 }
 0x273   :  { %1451 = vmatprep.subr.bf16.mxu1 %v1742_v61 }
 0x276   :  { %1452 = vmatpush3.bf16.msra.mxu1 %v1661_v40 }
 0x277   :  { %1453 = vmatprep.subr.bf16.mxu1 %v1742_v61 }
 0x27a   :  { %1454 = vmatpush3.bf16.msra.mxu1 %v1662_v41 }
 0x340   :  { %v1144_v43 = vpop.f32.mrb[8].mxu1 }
 0x341   :  { %v1145_v44 = vadd.f32 %v1376_v42, %v1144_v43  ;;  %v1445_v45 = vpop.f32.mrb[9].mxu1 }
 0x342   :  { %v1147_v46 = vpop.f32.mrb[10].mxu1 }
 0x343   :  { %v1150_v47 = vmax.f32 %v1145_v44, 0.0  ;;  %v1446_v48 = vpop.f32.mrb[11].mxu1 }
 0x345   :  { %v1151_v49 = vpack.c.bf16 %v1150_v47, %v1150_v47 }
 0x347   :  { %1456 = vmatmul.mubr.msk.bf16.vlgmr.msra.gmra.mrb[12].mxu1 %vm1191_vm2, %v1151_v49 }
 0x41a   :  { %v1229_v51 = vpop.f32.mrb[12].mxu1 }
 0x41b   :  { %v1230_v52 = vadd.f32 %v1385_v50, %v1229_v51  ;;  %v1457_v53 = vpop.f32.mrb[13].mxu1 }
 0x41c   :  { %v1232_v54 = vpop.f32.mrb[14].mxu1 }
 0x41d   :  { %v1235_v55 = vpack.c.bf16 %v1230_v52, %v1230_v52  ;;  %v1458_v57 = vpop.f32.mrb[15].mxu1 }
 0x41f   :  { %1236 = vst [vmem:[#allocation7] sm:$0xf] %v1235_v55 }
 0x420   :  { %1718 = shalt.err (!%p1715_p6)
}
 0x421   :  { %s1719_s8 = scalar_lea.hbm %s1926_s9, 64 }
 0x422   :  { %p1720_p7 = scmp.ne.s32.totalorder %s1926_s9, %s1719_s8  ;;  %p1723_p8 = scmp.lt.u32.totalorder %s1719_s8, %s1926_s9 }
 0x424   :  { %p1725_p9 = pnand %p1723_p8, %p1720_p7 }
 0x426   :  { %1728 = shalt.err (!%p1725_p9)
}
 0x427   :  { %1246 = dma.vmem_to_hbm [thread:$0]  %s1244_s25, 64, %s1926_s9, [#allocation4]  }
 0x428   :  { %1733 = dma.done.wait [#allocation4], 64  }
 0x429   :  { %1734 = vsyncadd [#allocation4], 4294967232 }
 0x42a   :  { %1250 = vsyncpa [#allocation3], 1 }
 0x42b   :  { %1251 = vsyncpa [#allocation6], 1 }
 0x42c   :  { %1252 = vsyncpa [#allocation4], 1 }

</bundles_post_ra>
